<compile_context>
chip_gen: v7x
topology: tpu7x:2x2x1
jax: 0.10.0
libtpu: 0.0.40
codegen_flags: <defaults>
</compile_context>

<pallas_src>
import jax
import jax.numpy as jnp
from jax.experimental import pallas as pl
from jax.experimental.pallas import tpu as pltpu


def _round_up(x, m):
    return (x + m - 1) // m * m


def _cdiv(a, b):
    return (a + b - 1) // b


def _vmem_capacity_bytes():
    """Physical VMEM of the local TPU generation (64 MiB v7x, 128 MiB v5e/v6e)."""
    try:
        return int(pltpu.get_tpu_info().vmem_capacity_bytes)
    except Exception:
        return 64 * 2**20  # conservative (v7x-sized) fallback


def _pick_e_tile(k_pad, e_pad, weight_budget_bytes):
    """Largest multiple-of-128 divisor of e_pad whose (double-buffered, bf16)
    weight block fits the budget.  e_pad is always a multiple of 128."""
    divisors = [d for d in range(128, e_pad + 1, 128) if e_pad % d == 0]
    fitting = [d for d in divisors if 2 * k_pad * d * 2 <= weight_budget_bytes]
    return max(fitting) if fitting else divisors[0]


def _pick_token_tile(m, k_pad, te, out_bytes, tile_budget_bytes):
    """Token-tile rows: as large as the VMEM budget allows (roofline plateau is at
    512-1024 rows), a multiple of 16 (bf16 sublane pack), and at least two tiles
    when m is large enough so the parallel axis can split across v7x's 2 TCs."""
    per_row = 2 * (k_pad * 2 + te * out_bytes)  # double-buffered input + output tile
    tm = max(16, min(1024, (tile_budget_bytes // max(per_row, 1)) // 16 * 16))
    if m > 16:
        tm = max(16, min(tm, _round_up(_cdiv(m, 2), 16)))  # >= 2 grid steps
    else:
        tm = _round_up(max(m, 1), 8)                        # single exact-ish block
    return tm


def _proj_kernel(p_ref, w_ref, b_ref, o_ref):
    # p_ref: (TM, K_pad) bf16 token rows   (pipelined / double-buffered)
    # w_ref: (TE, K_pad) bf16 weight       (resident along the token axis)
    # b_ref: (1,  TE)    f32 bias          (resident)
    # o_ref: (TM, TE)    out_dtype
    acc = jax.lax.dot_general(
        p_ref[...], w_ref[...],
        dimension_numbers=(((1,), (1,)), ((), ())),   # contract K with K  (A @ B^T)
        preferred_element_type=jnp.float32)
    o_ref[...] = (acc + b_ref[...]).astype(o_ref.dtype)


def patch_embed_forward(x, weight, bias, *, tube_size, patch_size,
                        out_dtype=jnp.bfloat16):
    """x: (b, t, c, h, w).  weight: (E, c, tube, P, P).  bias: (E,).

    Returns (b, t // tube, (h // P) * (w // P), E), matching
    'b t c h w -> b c t h w' -> Conv3d -> 'b c t h w -> b t (h w) c'.
    """
    b, t, c, h, w = x.shape
    E = weight.shape[0]
    P = patch_size
    assert t % tube_size == 0 and h % P == 0 and w % P == 0
    t_out, h_out, w_out = t // tube_size, h // P, w // P
    K = c * tube_size * P * P
    M = b * t_out * h_out * w_out

    # ---- layout glue (XLA): extract non-overlapping 3D patches, bf16 ------------
    # TODO(synk): fuse this patchify into the kernel to avoid the (M, K) HBM round trip.
    xp = x.astype(jnp.bfloat16).reshape(b, t_out, tube_size, c, h_out, P, w_out, P)
    xp = xp.transpose(0, 1, 4, 6, 3, 2, 5, 7)          # (b, t', h', w', c, tube, P, P)
    patches = xp.reshape(M, K)                          # K-order (c, dt, dh, dw)

    w2d = weight.reshape(E, K).astype(jnp.bfloat16)     # (E, K): no host-side transpose
    b2d = bias.astype(jnp.float32).reshape(1, E)

    # ---- lane alignment: pad E (output lanes) and K (contraction, v5e MXU) to x128 ----
    E_pad = _round_up(E, 128)
    K_pad = _round_up(K, 128)
    if K_pad != K:
        patches = jnp.pad(patches, ((0, 0), (0, K_pad - K)))
    if E_pad != E or K_pad != K:
        w2d = jnp.pad(w2d, ((0, E_pad - E), (0, K_pad - K)))
    if E_pad != E:
        b2d = jnp.pad(b2d, ((0, 0), (0, E_pad - E)))

    # ---- generation-aware tiling / VMEM budget -----------------------------------
    out_bytes = jnp.dtype(out_dtype).itemsize
    vmem_cap = _vmem_capacity_bytes()
    vmem_limit = int(0.75 * vmem_cap)                    # headroom for Mosaic scratch
    TE = _pick_e_tile(K_pad, E_pad, vmem_limit // 4)     # resident weight <= ~25%
    tile_budget = vmem_limit - 2 * K_pad * TE * 2 - 2 * TE * 4
    TM = _pick_token_tile(M, K_pad, TE, out_bytes, tile_budget)
    n_e, n_m = _cdiv(E_pad, TE), _cdiv(M, TM)            # ragged last token tile is masked

    flops = 2 * M * K_pad * E_pad
    bytes_accessed = (n_e * M * K_pad * 2                # patches (re-read per E tile)
                      + E_pad * K_pad * 2 + E_pad * 4    # weight + bias
                      + M * E_pad * out_bytes)           # output
    try:
        cost = pl.CostEstimate(flops=int(flops), transcendentals=0,
                               bytes_accessed=int(bytes_accessed))
    except Exception:
        cost = None

    def _resident_spec(block_shape, index_map, single_buffer):
        if single_buffer:
            # constant index along the (inner) token axis -> never re-DMA'd there;
            # a single buffer saves VMEM for a larger token tile.
            return pl.BlockSpec(block_shape, index_map, pipeline_mode=pl.Buffered(1))
        return pl.BlockSpec(block_shape, index_map)

    def _call(single_buffer_resident):
        grid_spec = pltpu.PrefetchScalarGridSpec(
            num_scalar_prefetch=0,
            grid=(n_e, n_m),                               # token axis innermost
            in_specs=[
                pl.BlockSpec((TM, K_pad), lambda j, i: (i, 0)),            # token tile
                _resident_spec((TE, K_pad), lambda j, i: (j, 0),
                               single_buffer_resident),                    # weight
                _resident_spec((1, TE), lambda j, i: (0, j),
                               single_buffer_resident),                    # bias
            ],
            out_specs=pl.BlockSpec((TM, TE), lambda j, i: (i, j)),
        )
        return pl.pallas_call(
            _proj_kernel,
            out_shape=jax.ShapeDtypeStruct((M, E_pad), out_dtype),
            grid_spec=grid_spec,
            compiler_params=pltpu.CompilerParams(
                dimension_semantics=("parallel", "parallel"),  # megacore-shardable
                vmem_limit_bytes=vmem_limit),
            cost_estimate=cost,
        )(patches, w2d, b2d)

    try:
        out = _call(True)
    except Exception:
        # pipeline_mode=pl.Buffered(1) unsupported on this jax/libtpu combo:
        # fall back to default (double-buffered) resident specs.
        out = _call(False)

    if E_pad != E:
        out = out[:, :E]                                  # only crop when E was padded
    # (M, E) -> (b, t', (h' w'), E)   == 'b c t h w -> b t (h w) c'
    return out.reshape(b, t_out, h_out * w_out, E)


def make_params(key, *, in_channels, embed_dims, tube_size, patch_size):
    """Deterministic synthetic init mimicking kaiming(fan_in, relu) + zero bias."""
    P = patch_size
    fan_in = in_channels * tube_size * P * P
    std = (2.0 / fan_in) ** 0.5
    weight = std * jax.random.normal(
        key, (embed_dims, in_channels, tube_size, P, P), dtype=jnp.float32)
    bias = jnp.zeros((embed_dims,), dtype=jnp.float32)
    return weight, bias


if __name__ == "__main__":
    # small shapes: batch=2, t=2, in_channels=4, img=16x16, patch=8, tube=2, embed=32
    b, t, c, h, w = 2, 2, 4, 16, 16
    tube_size, patch_size, embed_dims = 2, 8, 32

    key = jax.random.PRNGKey(0)
    kx, kw = jax.random.split(key)
    x = jax.random.normal(kx, (b, t, c, h, w), dtype=jnp.float32)
    weight, bias = make_params(kw, in_channels=c, embed_dims=embed_dims,
                               tube_size=tube_size, patch_size=patch_size)

    out = jax.block_until_ready(
        patch_embed_forward(x, weight, bias,
                            tube_size=tube_size, patch_size=patch_size))

    t_out, h_out, w_out = t // tube_size, h // patch_size, w // patch_size
    assert out.shape == (b, t_out, h_out * w_out, embed_dims)
    out_f32 = out.astype(jnp.float32)

    # Reference 1: exact module semantics (f32 Conv3d).  Loose tolerance since the
    # kernel deliberately runs the matmul in bf16 (f32 accumulation) and emits bf16.
    x_ncdhw = jnp.transpose(x, (0, 2, 1, 3, 4))  # b c t h w
    ref_f32 = jax.lax.conv_general_dilated(
        x_ncdhw, weight,
        window_strides=(tube_size, patch_size, patch_size),
        padding="VALID",
        dimension_numbers=("NCDHW", "OIDHW", "NCDHW"),
    ) + bias[None, :, None, None, None]
    ref_f32 = jnp.transpose(ref_f32, (0, 2, 3, 4, 1)).reshape(out.shape)
    assert jnp.allclose(out_f32, ref_f32, atol=3e-2, rtol=3e-2), \
        float(jnp.max(jnp.abs(out_f32 - ref_f32)))

    # Reference 2: same bf16 math outside Pallas (only output rounding / accumulation
    # order differ).
    K = c * tube_size * patch_size * patch_size
    xp = x.reshape(b, t_out, tube_size, c, h_out, patch_size, w_out, patch_size)
    xp = xp.transpose(0, 1, 4, 6, 3, 2, 5, 7).reshape(-1, K)
    ref_bf16 = jnp.dot(xp.astype(jnp.bfloat16),
                       weight.reshape(embed_dims, K).T.astype(jnp.bfloat16),
                       preferred_element_type=jnp.float32) + bias[None, :]
    ref_bf16 = ref_bf16.reshape(out.shape)
    assert jnp.allclose(out_f32, ref_bf16, atol=1.5e-2, rtol=1.5e-2), \
        float(jnp.max(jnp.abs(out_f32 - ref_bf16)))

    print("KERNEL_OK")
</pallas_src>

<mosaic_0001>
module attributes {stable_mosaic.version = 11 : i64} {
  func.func @_proj_kernel(%arg0: i32, %arg1: i32, %arg2: memref<8x512xbf16, #tpu.memory_space<vmem>>, %arg3: memref<128x512xbf16, #tpu.memory_space<vmem>>, %arg4: memref<1x128xf32, #tpu.memory_space<vmem>>, %arg5: memref<8x128xbf16, #tpu.memory_space<vmem>>) attributes {dimension_semantics = [#tpu.dimension_semantics<parallel>, #tpu.dimension_semantics<parallel>], iteration_bounds = array<i64: 1, 1>, scalar_prefetch = 0 : i64, scratch_operands = 0 : i64, tpu.core_type = #tpu.core_type<tc>, window_params = [{transform_indices = @transform_0, window_bounds = array<i64: 8, 512>}, {pipeline_mode = #tpu.pipeline_mode<synchronous>, transform_indices = @transform_1, window_bounds = array<i64: 128, 512>}, {pipeline_mode = #tpu.pipeline_mode<synchronous>, transform_indices = @transform_2, window_bounds = array<i64: 1, 128>}, {transform_indices = @transform_3, window_bounds = array<i64: 8, 128>}]} {
    %c0 = arith.constant 0 : index
    %c0_0 = arith.constant 0 : index
    %0 = vector.load %arg2[%c0, %c0_0] : memref<8x512xbf16, #tpu.memory_space<vmem>>, vector<8x512xbf16>
    %c0_1 = arith.constant 0 : index
    %c0_2 = arith.constant 0 : index
    %1 = vector.load %arg3[%c0_1, %c0_2] : memref<128x512xbf16, #tpu.memory_space<vmem>>, vector<128x512xbf16>
    %cst = arith.constant dense<0.000000e+00> : vector<8x128xf32>
    %2 = tpu.matmul %0, %1, %cst {dimension_numbers = #tpu.dot_dimension_numbers<[1], [1], [0], [0], [0, 0, 1, 0], [], []>} : vector<8x512xbf16>, vector<128x512xbf16>, vector<8x128xf32> -> vector<8x128xf32>
    %c0_3 = arith.constant 0 : index
    %c0_4 = arith.constant 0 : index
    %3 = vector.load %arg4[%c0_3, %c0_4] : memref<1x128xf32, #tpu.memory_space<vmem>>, vector<1x128xf32>
    %4 = vector.broadcast %3 : vector<1x128xf32> to vector<8x128xf32>
    %5 = arith.addf %2, %4 : vector<8x128xf32>
    %6 = arith.truncf %5 : vector<8x128xf32> to vector<8x128xbf16>
    %c0_5 = arith.constant 0 : index
    %c0_6 = arith.constant 0 : index
    %7 = vector.load %arg5[%c0_5, %c0_6] : memref<8x128xbf16, #tpu.memory_space<vmem>>, vector<8x128xbf16>
    tpu.vector_store %arg5[%c0_5, %c0_6], %6 {strides = array<i32>} : memref<8x128xbf16, #tpu.memory_space<vmem>>, vector<8x128xbf16>,
    return
  }
  func.func @transform_0(%arg0: i32, %arg1: i32) -> (i32, i32) {
    %c0_i32 = arith.constant 0 : i32
    %c0_i32_0 = arith.constant 0 : i32
    return %arg1, %c0_i32 : i32, i32
  }
  func.func @transform_1(%arg0: i32, %arg1: i32) -> (i32, i32) {
    %c0_i32 = arith.constant 0 : i32
    %c0_i32_0 = arith.constant 0 : i32
    return %arg0, %c0_i32 : i32, i32
  }
  func.func @transform_2(%arg0: i32, %arg1: i32) -> (i32, i32) {
    %c0_i32 = arith.constant 0 : i32
    %c0_i32_0 = arith.constant 0 : i32
    return %c0_i32, %arg0 : i32, i32
  }
  func.func @transform_3(%arg0: i32, %arg1: i32) -> (i32, i32) {
    %c0_i32 = arith.constant 0 : i32
    return %arg1, %arg0 : i32, i32
  }
}

module attributes {stable_mosaic.version = 11 : i64} {
  func.func @_proj_kernel(%arg0: i32, %arg1: i32, %arg2: memref<8x512xbf16, #tpu.memory_space<vmem>>, %arg3: memref<128x512xbf16, #tpu.memory_space<vmem>>, %arg4: memref<1x128xf32, #tpu.memory_space<vmem>>, %arg5: memref<8x128xbf16, #tpu.memory_space<vmem>>) attributes {dimension_semantics = [#tpu.dimension_semantics<parallel>, #tpu.dimension_semantics<parallel>], iteration_bounds = array<i64: 1, 1>, scalar_prefetch = 0 : i64, scratch_operands = 0 : i64, tpu.core_type = #tpu.core_type<tc>, window_params = [{transform_indices = @transform_0, window_bounds = array<i64: 8, 512>}, {transform_indices = @transform_1, window_bounds = array<i64: 128, 512>}, {transform_indices = @transform_2, window_bounds = array<i64: 1, 128>}, {transform_indices = @transform_3, window_bounds = array<i64: 8, 128>}]} {
    %c0 = arith.constant 0 : index
    %c0_0 = arith.constant 0 : index
    %0 = vector.load %arg2[%c0, %c0_0] : memref<8x512xbf16, #tpu.memory_space<vmem>>, vector<8x512xbf16>
    %c0_1 = arith.constant 0 : index
    %c0_2 = arith.constant 0 : index
    %1 = vector.load %arg3[%c0_1, %c0_2] : memref<128x512xbf16, #tpu.memory_space<vmem>>, vector<128x512xbf16>
    %cst = arith.constant dense<0.000000e+00> : vector<8x128xf32>
    %2 = tpu.matmul %0, %1, %cst {dimension_numbers = #tpu.dot_dimension_numbers<[1], [1], [0], [0], [0, 0, 1, 0], [], []>} : vector<8x512xbf16>, vector<128x512xbf16>, vector<8x128xf32> -> vector<8x128xf32>
    %c0_3 = arith.constant 0 : index
    %c0_4 = arith.constant 0 : index
    %3 = vector.load %arg4[%c0_3, %c0_4] : memref<1x128xf32, #tpu.memory_space<vmem>>, vector<1x128xf32>
    %4 = vector.broadcast %3 : vector<1x128xf32> to vector<8x128xf32>
    %5 = arith.addf %2, %4 : vector<8x128xf32>
    %6 = arith.truncf %5 : vector<8x128xf32> to vector<8x128xbf16>
    %c0_5 = arith.constant 0 : index
    %c0_6 = arith.constant 0 : index
    %7 = vector.load %arg5[%c0_5, %c0_6] : memref<8x128xbf16, #tpu.memory_space<vmem>>, vector<8x128xbf16>
    tpu.vector_store %arg5[%c0_5, %c0_6], %6 {strides = array<i32>} : memref<8x128xbf16, #tpu.memory_space<vmem>>, vector<8x128xbf16>,
    return
  }
  func.func @transform_0(%arg0: i32, %arg1: i32) -> (i32, i32) {
    %c0_i32 = arith.constant 0 : i32
    %c0_i32_0 = arith.constant 0 : i32
    return %arg1, %c0_i32 : i32, i32
  }
  func.func @transform_1(%arg0: i32, %arg1: i32) -> (i32, i32) {
    %c0_i32 = arith.constant 0 : i32
    %c0_i32_0 = arith.constant 0 : i32
    return %arg0, %c0_i32 : i32, i32
  }
  func.func @transform_2(%arg0: i32, %arg1: i32) -> (i32, i32) {
    %c0_i32 = arith.constant 0 : i32
    %c0_i32_0 = arith.constant 0 : i32
    return %c0_i32, %arg0 : i32, i32
  }
  func.func @transform_3(%arg0: i32, %arg1: i32) -> (i32, i32) {
    %c0_i32 = arith.constant 0 : i32
    return %arg1, %arg0 : i32, i32
  }
}

</mosaic_0001>

<bundles_post_ra>
// kernel: tpu_custom_call.1
= control target key start
LH: loop header
LB: loop body
LE: loop exit
PB: predicated region body
PF: predicated region fallthrough
CT: control target
= control target key end

     0   :  { %8 = vsyncpa [#allocation3], 0  ;;  %s594_s0 = inlined_call_operand.hbm [shape: bf16[8,512], index: 0, kind: input, shape index: {}]   ;;  %s595_s1 = inlined_call_operand.hbm [shape: bf16[128,512], index: 1, kind: input, shape index: {}]   ;;  %s596_s2 = inlined_call_operand.vmem [shape: f32[1,128], index: 2, kind: input, shape index: {}]   ;;  %s597_s3 = inlined_call_operand.hbm [shape: bf16[8,128], index: 3, kind: output, shape index: {}]  }
   0x1   :  { %9 = vsyncpa [#allocation6], 0 }
   0x2   :  { %10 = vsyncpa [#allocation4], 0  ;;  %s523_s12 = smov [#allocation2]   ;;  %s524_s14 = smov [#allocation5]  }
   0x3   :  { %s17_s13 = sshll.u32 %s523_s12, 4  ;;  %s26_s15 = sshll.u32 %s524_s14, 4  ;;  %s18_s13 = int_to_ptr.vmem [resolvable:$true] %s17_s13  ;;  %s548_s15 = int_to_ptr.vmem [resolvable:$true] %s26_s15 }
   0x4   :  { %s451_s18 = scalar_lea.hbm %s594_s0, 256 }
   0x5   :  { %p452_p0 = scmp.ne.s32.totalorder %s594_s0, %s451_s18  ;;  %p455_p1 = scmp.lt.u32.totalorder %s451_s18, %s594_s0 }
   0x7   :  { %p457_p2 = pnand %p455_p1, %p452_p0 }
   0x9   :  { %460 = shalt.err (!%p457_p2)
}
   0xa   :  { %s461_s23 = scalar_lea.vmem %s18_s13, 256  ;;  %p466_p4 = scmp.lt.s32.totalorder %s18_s13, %s18_s13 }
   0xb   :  { %p462_p3 = scmp.ne.s32.totalorder %s18_s13, %s461_s23  ;;  %p467_p5 = scmp.lt.s32.totalorder %s461_s23, %s461_s23 }
   0xd   :  { %p468_p6 = por %p467_p5, %p466_p4 }
   0xf   :  { %p469_p7 = pnand %p468_p6, %p462_p3 }
  0x11   :  { %472 = shalt.err (!%p469_p7)
}
  0x12   :  { %20 = dma.hbm_to_vmem [thread:$0]  %s594_s0, 256, %s18_s13, [#allocation3]  }
  0x13   :  { %s473_s28 = scalar_lea.hbm %s595_s1, 4096 }
  0x14   :  { %p474_p8 = scmp.ne.s32.totalorder %s595_s1, %s473_s28  ;;  %p477_p9 = scmp.lt.u32.totalorder %s473_s28, %s595_s1 }
  0x16   :  { %p479_p10 = pnand %p477_p9, %p474_p8 }
  0x18   :  { %482 = shalt.err (!%p479_p10)
}
  0x19   :  { %s483_s6 = scalar_lea.vmem %s548_s15, 4096  ;;  %p488_p12 = scmp.lt.s32.totalorder %s548_s15, %s548_s15 }
  0x1a   :  { %p484_p11 = scmp.ne.s32.totalorder %s548_s15, %s483_s6  ;;  %p489_p13 = scmp.lt.s32.totalorder %s483_s6, %s483_s6 }
  0x1c   :  { %p490_p0 = por %p489_p13, %p488_p12 }
  0x1e   :  { %p491_p1 = pnand %p490_p0, %p484_p11 }
  0x20   :  { %494 = shalt.err (!%p491_p1)
}
  0x21   :  { %s525_s0 = smov 256   ;;  %s526_s7 = smov 16  }
  0x22   :  { %32 = dma.hbm_to_vmem [thread:$0]  %s595_s1, 4096, %s548_s15, [#allocation6], %s525_s0, %s525_s0, %s526_s7  }
  0x23   :  { %517 = dma.done.wait [#allocation3], 256  }
  0x24   :  { %518 = vsyncadd [#allocation3], 4294967040 }
  0x25   :  { %519 = dma.done.wait [#allocation6], 4096  }
  0x26   :  { %520 = vsyncadd [#allocation6], 4294963200  ;;  %v399_v0 = vld [vmem:[#allocation5 + $0x4] ss:$16 sps:$4 sm:$0xff]   ;;  %v401_v1 = vld [vmem:[#allocation5 + $0xc] ss:$16 sps:$4 sm:$0xff]  }
  0x27   :  { %257 = vmatprep.subr.bf16.mxu1 %v399_v0  ;;  %v403_v2 = vld [vmem:[#allocation5] ss:$16 sps:$4 sm:$0xff]   ;;  %v404_v3 = vld [vmem:[#allocation5 + $0x8] ss:$16 sps:$4 sm:$0xff]   ;;  %297 = vmatprep.subr.bf16.mxu0 %v401_v1  ;;  %v405_v4 = vld [vmem:[#allocation5 + $0x24] ss:$16 sps:$4 sm:$0xff]  }
  0x28   :  { %258 = vmatpush1.bf16.xpose.msra.mxu1 %v403_v2  ;;  %298 = vmatpush1.bf16.xpose.msra.mxu0 %v404_v3  ;;  %v407_v5 = vld [vmem:[#allocation5 + $0x2c] ss:$16 sps:$4 sm:$0xff]   ;;  %v409_v6 = vld [vmem:[#allocation5 + $0x20] ss:$16 sps:$4 sm:$0xff]   ;;  %v410_v7 = vld [vmem:[#allocation5 + $0x28] ss:$16 sps:$4 sm:$0xff]  }
  0x29   :  { %259 = vmatprep.subr.bf16.mxu1 %v405_v4  ;;  %299 = vmatprep.subr.bf16.mxu0 %v407_v5  ;;  %v411_v8 = vld [vmem:[#allocation5 + $0x44] ss:$16 sps:$4 sm:$0xff]   ;;  %v413_v9 = vld [vmem:[#allocation5 + $0x4c] ss:$16 sps:$4 sm:$0xff]   ;;  %v415_v10 = vld [vmem:[#allocation5 + $0x40] ss:$16 sps:$4 sm:$0xff]  }
  0x2a   :  { %v416_v11 = vld [vmem:[#allocation5 + $0x48] ss:$16 sps:$4 sm:$0xff]   ;;  %v417_v12 = vld [vmem:[#allocation5 + $0x64] ss:$16 sps:$4 sm:$0xff]   ;;  %v419_v13 = vld [vmem:[#allocation5 + $0x6c] ss:$16 sps:$4 sm:$0xff]  }
  0x2b   :  { %v42_v14 = vld [vmem:[#allocation2] sm:$0xff]  ;;  %v43_v15 = vld [vmem:[#allocation2 + $0x8] sm:$0xff]  ;;  %s527_s11 = smov [#allocation7]  }
  0x2c   :  { %v357_v16 = vcombine.high %v42_v14, %v42_v14  ;;  %v359_v17 = vcombine.high %v43_v15, %v43_v15  ;;  %v421_v18 = vld [vmem:[#allocation5 + $0x60] ss:$16 sps:$4 sm:$0xff]   ;;  %v422_v19 = vld [vmem:[#allocation5 + $0x68] ss:$16 sps:$4 sm:$0xff]   ;;  %v423_v20 = vld [vmem:[#allocation5 + $0x84] ss:$16 sps:$4 sm:$0xff]   ;;  %v356_v36 = vcombine.low %v42_v14, %v42_v14  ;;  %v358_v37 = vcombine.low %v43_v15, %v43_v15 }
  0x2d   :  { %v425_v21 = vld [vmem:[#allocation5 + $0x8c] ss:$16 sps:$4 sm:$0xff]   ;;  %v427_v22 = vld [vmem:[#allocation5 + $0x80] ss:$16 sps:$4 sm:$0xff]   ;;  %v428_v23 = vld [vmem:[#allocation5 + $0x88] ss:$16 sps:$4 sm:$0xff]  }
  0x2e   :  { %289 = vmatprep.mubr.bf16.mxu1 %v357_v16  ;;  %329 = vmatprep.mubr.bf16.mxu0 %v359_v17  ;;  %v429_v24 = vld [vmem:[#allocation5 + $0xa4] ss:$16 sps:$4 sm:$0xff]   ;;  %v431_v25 = vld [vmem:[#allocation5 + $0xac] ss:$16 sps:$4 sm:$0xff]   ;;  %v433_v26 = vld [vmem:[#allocation5 + $0xa0] ss:$16 sps:$4 sm:$0xff]  }
  0x2f   :  { %v434_v27 = vld [vmem:[#allocation5 + $0xa8] ss:$16 sps:$4 sm:$0xff]   ;;  %v435_v28 = vld [vmem:[#allocation5 + $0xc4] ss:$16 sps:$4 sm:$0xff]   ;;  %v437_v29 = vld [vmem:[#allocation5 + $0xcc] ss:$16 sps:$4 sm:$0xff]  }
  0x30   :  { %260 = vmatpush1.bf16.xpose.msra.mxu1 %v409_v6  ;;  %300 = vmatpush1.bf16.xpose.msra.mxu0 %v410_v7  ;;  %v439_v30 = vld [vmem:[#allocation5 + $0xc0] ss:$16 sps:$4 sm:$0xff]   ;;  %v440_v31 = vld [vmem:[#allocation5 + $0xc8] ss:$16 sps:$4 sm:$0xff]   ;;  %v441_v32 = vld [vmem:[#allocation5 + $0xe4] ss:$16 sps:$4 sm:$0xff]  }
  0x31   :  { %261 = vmatprep.subr.bf16.mxu1 %v411_v8  ;;  %301 = vmatprep.subr.bf16.mxu0 %v413_v9  ;;  %v443_v33 = vld [vmem:[#allocation5 + $0xec] ss:$16 sps:$4 sm:$0xff]   ;;  %v445_v34 = vld [vmem:[#allocation5 + $0xe0] ss:$16 sps:$4 sm:$0xff]   ;;  %v446_v35 = vld [vmem:[#allocation5 + $0xe8] ss:$16 sps:$4 sm:$0xff]  }
  0x32   :  { %v355_v38 = vld [vmem:[%s596_s2] ss:$0 sm:$0xff]  ;;  %s345_s12 = sshll.u32 %s527_s11, 4  ;;  %s346_s12 = int_to_ptr.vmem [resolvable:$true] %s345_s12 }
  0x33   :  { %s495_s13 = scalar_lea.vmem %s346_s12, 64  ;;  %p500_p3 = scmp.lt.s32.totalorder %s346_s12, %s346_s12 }
  0x34   :  { %p496_p2 = scmp.ne.s32.totalorder %s346_s12, %s495_s13  ;;  %p501_p4 = scmp.lt.s32.totalorder %s495_s13, %s495_s13 }
  0x36   :  { %p502_p5 = por %p501_p4, %p500_p3 }
  0x38   :  { %262 = vmatpush1.bf16.xpose.msra.mxu1 %v415_v10  ;;  %302 = vmatpush1.bf16.xpose.msra.mxu0 %v416_v11  ;;  %p503_p6 = pnand %p502_p5, %p496_p2 }
  0x39   :  { %263 = vmatprep.subr.bf16.mxu1 %v417_v12  ;;  %303 = vmatprep.subr.bf16.mxu0 %v419_v13 }
  0x40   :  { %264 = vmatpush1.bf16.xpose.msra.mxu1 %v421_v18  ;;  %304 = vmatpush1.bf16.xpose.msra.mxu0 %v422_v19 }
  0x41   :  { %265 = vmatprep.subr.bf16.mxu1 %v423_v20  ;;  %305 = vmatprep.subr.bf16.mxu0 %v425_v21 }
  0x48   :  { %266 = vmatpush1.bf16.xpose.msra.mxu1 %v427_v22  ;;  %306 = vmatpush1.bf16.xpose.msra.mxu0 %v428_v23 }
  0x49   :  { %267 = vmatprep.subr.bf16.mxu1 %v429_v24  ;;  %307 = vmatprep.subr.bf16.mxu0 %v431_v25 }
  0x50   :  { %268 = vmatpush1.bf16.xpose.msra.mxu1 %v433_v26  ;;  %308 = vmatpush1.bf16.xpose.msra.mxu0 %v434_v27 }
  0x51   :  { %269 = vmatprep.subr.bf16.mxu1 %v435_v28  ;;  %309 = vmatprep.subr.bf16.mxu0 %v437_v29 }
  0x58   :  { %270 = vmatpush1.bf16.xpose.msra.mxu1 %v439_v30  ;;  %310 = vmatpush1.bf16.xpose.msra.mxu0 %v440_v31 }
  0x59   :  { %271 = vmatprep.subr.bf16.mxu1 %v441_v32  ;;  %311 = vmatprep.subr.bf16.mxu0 %v443_v33 }
  0x60   :  { %272 = vmatpush1.bf16.xpose.msra.mxu1 %v445_v34  ;;  %312 = vmatpush1.bf16.xpose.msra.mxu0 %v446_v35 }
  0x67   :  { %290 = vmatmul.mubr.bf16.vlgmr.msra.gmra.mrb[0].mxu1 %v356_v36  ;;  %330 = vmatmul.mubr.bf16.vlgmr.msra.gmra.mrb[0].mxu0 %v358_v37 }
 0x13a   :  { %v291_v39 = vpop.f32.mrb[0].mxu1  ;;  %v331_v40 = vpop.f32.mrb[0].mxu0 }
 0x13b   :  { %v292_v41 = vadd.f32 %v355_v38, %v291_v39  ;;  %v293_v42 = vpop.f32.mrb[1].mxu1  ;;  %v333_v43 = vpop.f32.mrb[1].mxu0 }
 0x13c   :  { %v294_v44 = vpop.f32.mrb[2].mxu1  ;;  %v334_v45 = vpop.f32.mrb[2].mxu0 }
 0x13d   :  { %v332_v46 = vadd.f32 %v331_v40, %v292_v41  ;;  %v295_v47 = vpop.f32.mrb[3].mxu1  ;;  %v335_v48 = vpop.f32.mrb[3].mxu0 }
 0x13f   :  { %v337_v49 = vpack.c.bf16 %v332_v46, %v332_v46 }
 0x141   :  { %338 = vst [vmem:[#allocation7] sm:$0xf] %v337_v49 }
 0x142   :  { %506 = shalt.err (!%p503_p6)
}
 0x143   :  { %s507_s15 = scalar_lea.hbm %s597_s3, 64 }
 0x144   :  { %p508_p7 = scmp.ne.s32.totalorder %s597_s3, %s507_s15  ;;  %p511_p8 = scmp.lt.u32.totalorder %s507_s15, %s597_s3 }
 0x146   :  { %p513_p9 = pnand %p511_p8, %p508_p7 }
 0x148   :  { %516 = shalt.err (!%p513_p9)
}
 0x149   :  { %348 = dma.vmem_to_hbm [thread:$0]  %s346_s12, 64, %s597_s3, [#allocation4]  }
 0x14a   :  { %521 = dma.done.wait [#allocation4], 64  }
 0x14b   :  { %522 = vsyncadd [#allocation4], 4294967232 }
 0x14c   :  { %352 = vsyncpa [#allocation3], 1 }
 0x14d   :  { %353 = vsyncpa [#allocation6], 1 }
 0x14e   :  { %354 = vsyncpa [#allocation4], 1 }

// kernel: tpu_custom_call.1
= control target key start
LH: loop header
LB: loop body
LE: loop exit
PB: predicated region body
PF: predicated region fallthrough
CT: control target
= control target key end

     0   :  { %8 = vsyncpa [#allocation3], 0  ;;  %s594_s0 = inlined_call_operand.hbm [shape: bf16[8,512], index: 0, kind: input, shape index: {}]   ;;  %s595_s1 = inlined_call_operand.hbm [shape: bf16[128,512], index: 1, kind: input, shape index: {}]   ;;  %s596_s2 = inlined_call_operand.vmem [shape: f32[1,128], index: 2, kind: input, shape index: {}]   ;;  %s597_s3 = inlined_call_operand.hbm [shape: bf16[8,128], index: 3, kind: output, shape index: {}]  }
   0x1   :  { %9 = vsyncpa [#allocation6], 0 }
   0x2   :  { %10 = vsyncpa [#allocation4], 0  ;;  %s523_s12 = smov [#allocation2]   ;;  %s524_s14 = smov [#allocation5]  }
   0x3   :  { %s17_s13 = sshll.u32 %s523_s12, 4  ;;  %s26_s15 = sshll.u32 %s524_s14, 4  ;;  %s18_s13 = int_to_ptr.vmem [resolvable:$true] %s17_s13  ;;  %s548_s15 = int_to_ptr.vmem [resolvable:$true] %s26_s15 }
   0x4   :  { %s451_s18 = scalar_lea.hbm %s594_s0, 256 }
   0x5   :  { %p452_p0 = scmp.ne.s32.totalorder %s594_s0, %s451_s18  ;;  %p455_p1 = scmp.lt.u32.totalorder %s451_s18, %s594_s0 }
   0x7   :  { %p457_p2 = pnand %p455_p1, %p452_p0 }
   0x9   :  { %460 = shalt.err (!%p457_p2)
}
   0xa   :  { %s461_s23 = scalar_lea.vmem %s18_s13, 256  ;;  %p466_p4 = scmp.lt.s32.totalorder %s18_s13, %s18_s13 }
   0xb   :  { %p462_p3 = scmp.ne.s32.totalorder %s18_s13, %s461_s23  ;;  %p467_p5 = scmp.lt.s32.totalorder %s461_s23, %s461_s23 }
   0xd   :  { %p468_p6 = por %p467_p5, %p466_p4 }
   0xf   :  { %p469_p7 = pnand %p468_p6, %p462_p3 }
  0x11   :  { %472 = shalt.err (!%p469_p7)
}
  0x12   :  { %20 = dma.hbm_to_vmem [thread:$0]  %s594_s0, 256, %s18_s13, [#allocation3]  }
  0x13   :  { %s473_s28 = scalar_lea.hbm %s595_s1, 4096 }
  0x14   :  { %p474_p8 = scmp.ne.s32.totalorder %s595_s1, %s473_s28  ;;  %p477_p9 = scmp.lt.u32.totalorder %s473_s28, %s595_s1 }
  0x16   :  { %p479_p10 = pnand %p477_p9, %p474_p8 }
  0x18   :  { %482 = shalt.err (!%p479_p10)
}
  0x19   :  { %s483_s6 = scalar_lea.vmem %s548_s15, 4096  ;;  %p488_p12 = scmp.lt.s32.totalorder %s548_s15, %s548_s15 }
  0x1a   :  { %p484_p11 = scmp.ne.s32.totalorder %s548_s15, %s483_s6  ;;  %p489_p13 = scmp.lt.s32.totalorder %s483_s6, %s483_s6 }
  0x1c   :  { %p490_p0 = por %p489_p13, %p488_p12 }
  0x1e   :  { %p491_p1 = pnand %p490_p0, %p484_p11 }
  0x20   :  { %494 = shalt.err (!%p491_p1)
}
  0x21   :  { %s525_s0 = smov 256   ;;  %s526_s7 = smov 16  }
  0x22   :  { %32 = dma.hbm_to_vmem [thread:$0]  %s595_s1, 4096, %s548_s15, [#allocation6], %s525_s0, %s525_s0, %s526_s7  }
  0x23   :  { %517 = dma.done.wait [#allocation3], 256  }
  0x24   :  { %518 = vsyncadd [#allocation3], 4294967040 }
  0x25   :  { %519 = dma.done.wait [#allocation6], 4096  }
  0x26   :  { %520 = vsyncadd [#allocation6], 4294963200  ;;  %v399_v0 = vld [vmem:[#allocation5 + $0x4] ss:$16 sps:$4 sm:$0xff]   ;;  %v401_v1 = vld [vmem:[#allocation5 + $0xc] ss:$16 sps:$4 sm:$0xff]  }
  0x27   :  { %257 = vmatprep.subr.bf16.mxu1 %v399_v0  ;;  %v403_v2 = vld [vmem:[#allocation5] ss:$16 sps:$4 sm:$0xff]   ;;  %v404_v3 = vld [vmem:[#allocation5 + $0x8] ss:$16 sps:$4 sm:$0xff]   ;;  %297 = vmatprep.subr.bf16.mxu0 %v401_v1  ;;  %v405_v4 = vld [vmem:[#allocation5 + $0x24] ss:$16 sps:$4 sm:$0xff]  }
  0x28   :  { %258 = vmatpush1.bf16.xpose.msra.mxu1 %v403_v2  ;;  %298 = vmatpush1.bf16.xpose.msra.mxu0 %v404_v3  ;;  %v407_v5 = vld [vmem:[#allocation5 + $0x2c] ss:$16 sps:$4 sm:$0xff]   ;;  %v409_v6 = vld [vmem:[#allocation5 + $0x20] ss:$16 sps:$4 sm:$0xff]   ;;  %v410_v7 = vld [vmem:[#allocation5 + $0x28] ss:$16 sps:$4 sm:$0xff]  }
  0x29   :  { %259 = vmatprep.subr.bf16.mxu1 %v405_v4  ;;  %299 = vmatprep.subr.bf16.mxu0 %v407_v5  ;;  %v411_v8 = vld [vmem:[#allocation5 + $0x44] ss:$16 sps:$4 sm:$0xff]   ;;  %v413_v9 = vld [vmem:[#allocation5 + $0x4c] ss:$16 sps:$4 sm:$0xff]   ;;  %v415_v10 = vld [vmem:[#allocation5 + $0x40] ss:$16 sps:$4 sm:$0xff]  }
  0x2a   :  { %v416_v11 = vld [vmem:[#allocation5 + $0x48] ss:$16 sps:$4 sm:$0xff]   ;;  %v417_v12 = vld [vmem:[#allocation5 + $0x64] ss:$16 sps:$4 sm:$0xff]   ;;  %v419_v13 = vld [vmem:[#allocation5 + $0x6c] ss:$16 sps:$4 sm:$0xff]  }
  0x2b   :  { %v42_v14 = vld [vmem:[#allocation2] sm:$0xff]  ;;  %v43_v15 = vld [vmem:[#allocation2 + $0x8] sm:$0xff]  ;;  %s527_s11 = smov [#allocation7]  }
  0x2c   :  { %v357_v16 = vcombine.high %v42_v14, %v42_v14  ;;  %v359_v17 = vcombine.high %v43_v15, %v43_v15  ;;  %v421_v18 = vld [vmem:[#allocation5 + $0x60] ss:$16 sps:$4 sm:$0xff]   ;;  %v422_v19 = vld [vmem:[#allocation5 + $0x68] ss:$16 sps:$4 sm:$0xff]   ;;  %v423_v20 = vld [vmem:[#allocation5 + $0x84] ss:$16 sps:$4 sm:$0xff]   ;;  %v356_v36 = vcombine.low %v42_v14, %v42_v14  ;;  %v358_v37 = vcombine.low %v43_v15, %v43_v15 }
  0x2d   :  { %v425_v21 = vld [vmem:[#allocation5 + $0x8c] ss:$16 sps:$4 sm:$0xff]   ;;  %v427_v22 = vld [vmem:[#allocation5 + $0x80] ss:$16 sps:$4 sm:$0xff]   ;;  %v428_v23 = vld [vmem:[#allocation5 + $0x88] ss:$16 sps:$4 sm:$0xff]  }
  0x2e   :  { %289 = vmatprep.mubr.bf16.mxu1 %v357_v16  ;;  %329 = vmatprep.mubr.bf16.mxu0 %v359_v17  ;;  %v429_v24 = vld [vmem:[#allocation5 + $0xa4] ss:$16 sps:$4 sm:$0xff]   ;;  %v431_v25 = vld [vmem:[#allocation5 + $0xac] ss:$16 sps:$4 sm:$0xff]   ;;  %v433_v26 = vld [vmem:[#allocation5 + $0xa0] ss:$16 sps:$4 sm:$0xff]  }
  0x2f   :  { %v434_v27 = vld [vmem:[#allocation5 + $0xa8] ss:$16 sps:$4 sm:$0xff]   ;;  %v435_v28 = vld [vmem:[#allocation5 + $0xc4] ss:$16 sps:$4 sm:$0xff]   ;;  %v437_v29 = vld [vmem:[#allocation5 + $0xcc] ss:$16 sps:$4 sm:$0xff]  }
  0x30   :  { %260 = vmatpush1.bf16.xpose.msra.mxu1 %v409_v6  ;;  %300 = vmatpush1.bf16.xpose.msra.mxu0 %v410_v7  ;;  %v439_v30 = vld [vmem:[#allocation5 + $0xc0] ss:$16 sps:$4 sm:$0xff]   ;;  %v440_v31 = vld [vmem:[#allocation5 + $0xc8] ss:$16 sps:$4 sm:$0xff]   ;;  %v441_v32 = vld [vmem:[#allocation5 + $0xe4] ss:$16 sps:$4 sm:$0xff]  }
  0x31   :  { %261 = vmatprep.subr.bf16.mxu1 %v411_v8  ;;  %301 = vmatprep.subr.bf16.mxu0 %v413_v9  ;;  %v443_v33 = vld [vmem:[#allocation5 + $0xec] ss:$16 sps:$4 sm:$0xff]   ;;  %v445_v34 = vld [vmem:[#allocation5 + $0xe0] ss:$16 sps:$4 sm:$0xff]   ;;  %v446_v35 = vld [vmem:[#allocation5 + $0xe8] ss:$16 sps:$4 sm:$0xff]  }
  0x32   :  { %v355_v38 = vld [vmem:[%s596_s2] ss:$0 sm:$0xff]  ;;  %s345_s12 = sshll.u32 %s527_s11, 4  ;;  %s346_s12 = int_to_ptr.vmem [resolvable:$true] %s345_s12 }
  0x33   :  { %s495_s13 = scalar_lea.vmem %s346_s12, 64  ;;  %p500_p3 = scmp.lt.s32.totalorder %s346_s12, %s346_s12 }
  0x34   :  { %p496_p2 = scmp.ne.s32.totalorder %s346_s12, %s495_s13  ;;  %p501_p4 = scmp.lt.s32.totalorder %s495_s13, %s495_s13 }
  0x36   :  { %p502_p5 = por %p501_p4, %p500_p3 }
  0x38   :  { %262 = vmatpush1.bf16.xpose.msra.mxu1 %v415_v10  ;;  %302 = vmatpush1.bf16.xpose.msra.mxu0 %v416_v11  ;;  %p503_p6 = pnand %p502_p5, %p496_p2 }
  0x39   :  { %263 = vmatprep.subr.bf16.mxu1 %v417_v12  ;;  %303 = vmatprep.subr.bf16.mxu0 %v419_v13 }
  0x40   :  { %264 = vmatpush1.bf16.xpose.msra.mxu1 %v421_v18  ;;  %304 = vmatpush1.bf16.xpose.msra.mxu0 %v422_v19 }
  0x41   :  { %265 = vmatprep.subr.bf16.mxu1 %v423_v20  ;;  %305 = vmatprep.subr.bf16.mxu0 %v425_v21 }
  0x48   :  { %266 = vmatpush1.bf16.xpose.msra.mxu1 %v427_v22  ;;  %306 = vmatpush1.bf16.xpose.msra.mxu0 %v428_v23 }
  0x49   :  { %267 = vmatprep.subr.bf16.mxu1 %v429_v24  ;;  %307 = vmatprep.subr.bf16.mxu0 %v431_v25 }
  0x50   :  { %268 = vmatpush1.bf16.xpose.msra.mxu1 %v433_v26  ;;  %308 = vmatpush1.bf16.xpose.msra.mxu0 %v434_v27 }
  0x51   :  { %269 = vmatprep.subr.bf16.mxu1 %v435_v28  ;;  %309 = vmatprep.subr.bf16.mxu0 %v437_v29 }
  0x58   :  { %270 = vmatpush1.bf16.xpose.msra.mxu1 %v439_v30  ;;  %310 = vmatpush1.bf16.xpose.msra.mxu0 %v440_v31 }
  0x59   :  { %271 = vmatprep.subr.bf16.mxu1 %v441_v32  ;;  %311 = vmatprep.subr.bf16.mxu0 %v443_v33 }
  0x60   :  { %272 = vmatpush1.bf16.xpose.msra.mxu1 %v445_v34  ;;  %312 = vmatpush1.bf16.xpose.msra.mxu0 %v446_v35 }
  0x67   :  { %290 = vmatmul.mubr.bf16.vlgmr.msra.gmra.mrb[0].mxu1 %v356_v36  ;;  %330 = vmatmul.mubr.bf16.vlgmr.msra.gmra.mrb[0].mxu0 %v358_v37 }
 0x13a   :  { %v291_v39 = vpop.f32.mrb[0].mxu1  ;;  %v331_v40 = vpop.f32.mrb[0].mxu0 }
 0x13b   :  { %v292_v41 = vadd.f32 %v355_v38, %v291_v39  ;;  %v293_v42 = vpop.f32.mrb[1].mxu1  ;;  %v333_v43 = vpop.f32.mrb[1].mxu0 }
 0x13c   :  { %v294_v44 = vpop.f32.mrb[2].mxu1  ;;  %v334_v45 = vpop.f32.mrb[2].mxu0 }
 0x13d   :  { %v332_v46 = vadd.f32 %v331_v40, %v292_v41  ;;  %v295_v47 = vpop.f32.mrb[3].mxu1  ;;  %v335_v48 = vpop.f32.mrb[3].mxu0 }
 0x13f   :  { %v337_v49 = vpack.c.bf16 %v332_v46, %v332_v46 }
 0x141   :  { %338 = vst [vmem:[#allocation7] sm:$0xf] %v337_v49 }
 0x142   :  { %506 = shalt.err (!%p503_p6)
}
 0x143   :  { %s507_s15 = scalar_lea.hbm %s597_s3, 64 }
 0x144   :  { %p508_p7 = scmp.ne.s32.totalorder %s597_s3, %s507_s15  ;;  %p511_p8 = scmp.lt.u32.totalorder %s507_s15, %s597_s3 }
 0x146   :  { %p513_p9 = pnand %p511_p8, %p508_p7 }
 0x148   :  { %516 = shalt.err (!%p513_p9)
}
 0x149   :  { %348 = dma.vmem_to_hbm [thread:$0]  %s346_s12, 64, %s597_s3, [#allocation4]  }
 0x14a   :  { %521 = dma.done.wait [#allocation4], 64  }
 0x14b   :  { %522 = vsyncadd [#allocation4], 4294967232 }
 0x14c   :  { %352 = vsyncpa [#allocation3], 1 }
 0x14d   :  { %353 = vsyncpa [#allocation6], 1 }
 0x14e   :  { %354 = vsyncpa [#allocation4], 1 }

</bundles_post_ra>
